<compile_context>
chip_gen: v6e
topology: v6e:2x2x1
jax: 0.10.0
libtpu: 0.0.40
codegen_flags: <defaults>
</compile_context>

<pallas_src>
import functools

import jax
import jax.numpy as jnp
from jax.experimental import pallas as pl
from jax.experimental.pallas import tpu as pltpu

_VMEM_LIMIT = 32 * 1024 * 1024


# --------------------- kernel 1: fused pixel decoder (projections + pool) ---------------------
# One pass over the input pixels produces, per pixel column p:
#   mask_features[:, p] = relu(Wm^T x[:, p] + bm)
#   pooled_sum         += Wp^T relu(We^T x[:, p] + be) + bp        (per-image accumulator)
# replacing what used to be three separate row-tiled matmul launches plus full HBM round
# trips of enc_features and enc_proj.

def _pixel_decoder_kernel(x_ref, wm_ref, bm_ref, we_ref, be_ref, wp_ref, bp_ref,
                          mf_ref, pooled_ref):
    x = x_ref[0]                                                         # [Cin, thw]
    mf = jnp.dot(wm_ref[...], x, preferred_element_type=jnp.float32) + bm_ref[...]
    mf_ref[0] = jnp.maximum(mf, 0.0).astype(mf_ref.dtype)                # [mask_dim, thw]

    enc = jnp.maximum(
        jnp.dot(we_ref[...], x, preferred_element_type=jnp.float32) + be_ref[...], 0.0)
    proj = jnp.dot(wp_ref[...], enc, preferred_element_type=jnp.float32) + bp_ref[...]
    tile_sum = jnp.sum(proj, axis=1, keepdims=True)                      # [hidden, 1]

    @pl.when(pl.program_id(1) == 0)
    def _init():
        pooled_ref[...] = jnp.zeros_like(pooled_ref)

    pooled_ref[0] = pooled_ref[0] + tile_sum


def fused_pixel_decoder_pallas(x, wm_t, bm, we_t, be, wp_t, bp, *, pixel_tile=4096):
    """x: [N, Cin, HW] channel-major.
    Returns (mask_features [N, mask_dim, HW_pad],
             pooled_sum    [N, hidden, 1]   -- sum over HW_pad pixels of enc-proj features,
             HW_pad)."""
    assert pixel_tile % 128 == 0
    N, Cin, HW = x.shape
    mask_dim, conv_dim, hidden = wm_t.shape[0], we_t.shape[0], wp_t.shape[0]

    if HW <= pixel_tile:
        thw, HW_pad = HW, HW
    else:
        thw = pixel_tile
        HW_pad = ((HW + thw - 1) // thw) * thw
        if HW_pad != HW:
            x = jnp.pad(x, ((0, 0), (0, 0), (0, HW_pad - HW)))

    mf, pooled_sum = pl.pallas_call(
        _pixel_decoder_kernel,
        out_shape=(jax.ShapeDtypeStruct((N, mask_dim, HW_pad), jnp.float32),
                   jax.ShapeDtypeStruct((N, hidden, 1), jnp.float32)),
        grid=(N, HW_pad // thw),
        in_specs=[
            pl.BlockSpec((1, Cin, thw), lambda n, t: (n, 0, t)),
            pl.BlockSpec((mask_dim, Cin), lambda n, t: (0, 0)),
            pl.BlockSpec((mask_dim, 1), lambda n, t: (0, 0)),
            pl.BlockSpec((conv_dim, Cin), lambda n, t: (0, 0)),
            pl.BlockSpec((conv_dim, 1), lambda n, t: (0, 0)),
            pl.BlockSpec((hidden, conv_dim), lambda n, t: (0, 0)),
            pl.BlockSpec((hidden, 1), lambda n, t: (0, 0)),
        ],
        out_specs=(
            pl.BlockSpec((1, mask_dim, thw), lambda n, t: (n, 0, t)),
            pl.BlockSpec((1, hidden, 1), lambda n, t: (n, 0, 0)),   # resident accumulator over t
        ),
        compiler_params=pltpu.CompilerParams(
            dimension_semantics=("parallel", "arbitrary"),
            vmem_limit_bytes=_VMEM_LIMIT),
    )(x, wm_t, bm.reshape(mask_dim, 1), we_t, be.reshape(conv_dim, 1),
      wp_t, bp.reshape(hidden, 1))
    return mf, pooled_sum, HW_pad


# ------------------------------- kernel 2: mask einsum -------------------------------
# pred_masks[n, q, p] = sum_c mask_embed[n, q, c] * mask_features[n, c, p]
# (the 'bqc,bchw->bqhw' einsum of the transformer predictor; HW stays flattened on the lane
#  axis and is tiled so production-sized blocks stay inside VMEM, e.g. on v7x's 64 MiB).

def _mask_einsum_kernel(me_ref, mf_ref, o_ref):
    o_ref[0] = jnp.dot(me_ref[0], mf_ref[0],
                       preferred_element_type=jnp.float32).astype(o_ref.dtype)


def mask_einsum_pallas(mask_embed, mask_features, *, pixel_tile=4096):
    """mask_embed: [N, Q, C], mask_features: [N, C, HWp] -> [N, Q, HWp]."""
    N, Q, C = mask_embed.shape
    HWp = mask_features.shape[-1]
    thw = HWp if HWp <= pixel_tile else pixel_tile
    assert HWp % thw == 0, (HWp, thw)
    return pl.pallas_call(
        _mask_einsum_kernel,
        out_shape=jax.ShapeDtypeStruct((N, Q, HWp), jnp.float32),
        grid=(N, HWp // thw),
        in_specs=[
            pl.BlockSpec((1, Q, C), lambda n, t: (n, 0, 0)),
            pl.BlockSpec((1, C, thw), lambda n, t: (n, 0, t)),
        ],
        out_specs=pl.BlockSpec((1, Q, thw), lambda n, t: (n, 0, t)),
        compiler_params=pltpu.CompilerParams(
            dimension_semantics=("parallel", "parallel"),
            vmem_limit_bytes=_VMEM_LIMIT),
    )(mask_embed, mask_features)


# ---------------------------- kernel 3: bilinear x4 upsample ----------------------------
# out = A_h @ pred @ A_w^T  (exact F.interpolate(..., mode='bilinear', align_corners=False)),
# batched over all Q masks of an image: one [Q*H, W] @ [W, Wo] MXU pass for the W axis and Q
# small [Ho, H] @ [H, Wo] passes for the H axis (instead of one tiny kernel per (n, q)).
# TODO(synk): at production Q/H/W the (Q, Ho, Wo) output block should additionally be tiled
# (and the mask einsum fused in) to stay under v7x's 64 MiB VMEM.

def _upsample_kernel(x_ref, ah_ref, awt_ref, o_ref, *, num_q, h_in):
    t = jnp.dot(x_ref[0], awt_ref[...], preferred_element_type=jnp.float32)   # [Q*H, Wo]
    for q in range(num_q):                                                     # static unroll
        o_ref[0, q] = jnp.dot(ah_ref[...], t[q * h_in:(q + 1) * h_in, :],
                              preferred_element_type=jnp.float32).astype(o_ref.dtype)


def bilinear_upsample_pallas(x, ah, awt):
    """x: [N, Q, H, W] -> [N, Q, Ho, Wo] with ah: [Ho, H], awt: [W, Wo] precomputed."""
    N, Q, H, W = x.shape
    Ho, Wo = ah.shape[0], awt.shape[1]
    x2 = x.reshape(N, Q * H, W)                      # free (contiguous) reshape on the host side
    return pl.pallas_call(
        functools.partial(_upsample_kernel, num_q=Q, h_in=H),
        out_shape=jax.ShapeDtypeStruct((N, Q, Ho, Wo), jnp.float32),
        grid=(N,),
        in_specs=[
            pl.BlockSpec((1, Q * H, W), lambda n: (n, 0, 0)),
            pl.BlockSpec((Ho, H), lambda n: (0, 0)),
            pl.BlockSpec((W, Wo), lambda n: (0, 0)),
        ],
        out_specs=pl.BlockSpec((1, Q, Ho, Wo), lambda n: (n, 0, 0, 0)),
        compiler_params=pltpu.CompilerParams(
            dimension_semantics=("parallel",),
            vmem_limit_bytes=_VMEM_LIMIT),
    )(x2, ah, awt)


def _bilinear_matrix(in_size, out_size):
    # Interpolation matrix matching torch F.interpolate(mode='bilinear', align_corners=False).
    scale = in_size / out_size
    dst = jnp.arange(out_size, dtype=jnp.float32)
    src = jnp.maximum((dst + 0.5) * scale - 0.5, 0.0)
    x0f = jnp.floor(src)
    lam = src - x0f
    x0 = jnp.minimum(x0f.astype(jnp.int32), in_size - 1)
    x1 = jnp.minimum(x0 + 1, in_size - 1)
    rows = jnp.arange(out_size)
    m = jnp.zeros((out_size, in_size), jnp.float32)
    m = m.at[rows, x0].add(1.0 - lam)
    m = m.at[rows, x1].add(lam)
    return m


# -------------------------------- Head (forward glue) --------------------------------

class PerPixelBaselinePlusHeadPallas:
    """Inference forward of PerPixelBaselinePlusHead.

    pixel_decoder / transformer_predictor are externally injected nn.Modules in the original
    code; here they are deterministic stand-ins whose hot paths (the per-pixel 1x1 convs, the
    pooled-query mask-embed MLP and the 'bqc,bchw->bqhw' mask einsum) run as Pallas kernels.
    The head-owned bilinear x4 upsample matches F.interpolate(..., align_corners=False) exactly.
    """
    COMMON_STRIDE = 4  # self.common_stride

    def __init__(self, key, in_channels=4, conv_dim=32, mask_dim=32, hidden_dim=32,
                 num_queries=8, pixel_tile=4096):
        ks = jax.random.split(key, 6)
        s = 0.1
        self.in_channels, self.conv_dim = in_channels, conv_dim
        self.mask_dim, self.hidden_dim, self.num_queries = mask_dim, hidden_dim, num_queries
        self.pixel_tile = pixel_tile
        # TODO(synk): pixel_decoder is an injected FPN/TransformerEncoderPixelDecoder; stood in
        # by two deterministic 1x1 convs producing mask_features / transformer_encoder_features.
        self.pd_mask_w = s * jax.random.normal(ks[0], (in_channels, mask_dim), jnp.float32)
        self.pd_mask_b = jnp.zeros((mask_dim,), jnp.float32)
        self.pd_enc_w = s * jax.random.normal(ks[1], (in_channels, conv_dim), jnp.float32)
        self.pd_enc_b = jnp.zeros((conv_dim,), jnp.float32)
        # TODO(synk): transformer_predictor is an injected StandardTransformerDecoder; stood in
        # by learned queries + mean-pooled encoder features -> mask-embed MLP.
        self.query_embed = s * jax.random.normal(ks[2], (num_queries, hidden_dim), jnp.float32)
        self.enc_proj_w = s * jax.random.normal(ks[3], (conv_dim, hidden_dim), jnp.float32)
        self.enc_proj_b = jnp.zeros((hidden_dim,), jnp.float32)
        self.mlp_w1 = s * jax.random.normal(ks[4], (hidden_dim, hidden_dim), jnp.float32)
        self.mlp_b1 = jnp.zeros((hidden_dim,), jnp.float32)
        self.mlp_w2 = s * jax.random.normal(ks[5], (hidden_dim, mask_dim), jnp.float32)
        self.mlp_b2 = jnp.zeros((mask_dim,), jnp.float32)
        # Pre-transposed (output-major) weight copies so the kernels contract channels on the
        # MXU with pixels on the lane axis (no host-side NCHW->NHWC transpose anywhere).
        self.wm_t = jnp.transpose(self.pd_mask_w)        # [mask_dim, Cin]
        self.we_t = jnp.transpose(self.pd_enc_w)         # [conv_dim, Cin]
        self.wp_t = jnp.transpose(self.enc_proj_w)       # [hidden,   conv_dim]
        # Cached bilinear interpolation matrices keyed by input spatial size.
        self._interp_cache = {}

    def _interp_matrices(self, H, W):
        key = (H, W)
        if key not in self._interp_cache:
            ah = _bilinear_matrix(H, H * self.COMMON_STRIDE)                    # [Ho, H]
            awt = jnp.transpose(_bilinear_matrix(W, W * self.COMMON_STRIDE))    # [W, Wo]
            self._interp_cache[key] = (ah, awt)
        return self._interp_cache[key]

    def layers(self, features):
        x = features["res2"]                                   # [N, Cin, H, W] (NCHW)
        N, Cin, H, W = x.shape
        HW = H * W
        x_flat = x.reshape(N, Cin, HW)                         # free reshape, stays channel-major

        # --- pixel decoder stand-in: fused projections + pooled-sum accumulator ---
        mask_features, pooled_sum, HW_pad = fused_pixel_decoder_pallas(
            x_flat, self.wm_t, self.pd_mask_b, self.we_t, self.pd_enc_b,
            self.wp_t, self.enc_proj_b, pixel_tile=self.pixel_tile)
        if HW_pad != HW:
            # zero-padded pixels each contribute Wp^T relu(be) + bp to the pooled sum
            pad_col = (self.wp_t @ jnp.maximum(self.pd_enc_b, 0.0)[:, None]
                       + self.enc_proj_b[:, None])             # [hidden, 1]
            pooled_sum = pooled_sum - (HW_pad - HW) * pad_col[None]
        pooled = pooled_sum[:, :, 0] / HW                      # [N, hidden]

        # --- transformer predictor stand-in (tiny query MLP: plain JAX, not worth a launch) ---
        q = self.query_embed[None, :, :] + pooled[:, None, :]                 # [N, Q, hidden]
        h = jnp.maximum(jnp.einsum("nqh,hk->nqk", q, self.mlp_w1) + self.mlp_b1, 0.0)
        mask_embed = jnp.einsum("nqh,hk->nqk", h, self.mlp_w2) + self.mlp_b2  # [N, Q, mask_dim]

        pred = mask_einsum_pallas(mask_embed, mask_features, pixel_tile=self.pixel_tile)
        if HW_pad != HW:
            pred = pred[:, :, :HW]
        pred_masks = pred.reshape(N, self.num_queries, H, W)
        return pred_masks, None  # aux_outputs only used for deep supervision at train time

    def forward(self, features):
        # Inference branch of PerPixelBaselinePlusHead.forward
        x, _aux = self.layers(features)
        _, _, H, W = x.shape
        ah, awt = self._interp_matrices(H, W)
        x = bilinear_upsample_pallas(x, ah, awt)
        return x, {}


def _reference_forward(head, features):
    # Pure-JAX reference of the identical pipeline (validates the Pallas kernels).
    x = features["res2"]
    N, Cin, H, W = x.shape
    xp = jnp.transpose(x, (0, 2, 3, 1)).reshape(N * H * W, Cin)
    mask_features = jnp.maximum(xp @ head.pd_mask_w + head.pd_mask_b, 0.0)
    enc_features = jnp.maximum(xp @ head.pd_enc_w + head.pd_enc_b, 0.0)
    enc_proj = enc_features @ head.enc_proj_w + head.enc_proj_b
    pooled = jnp.mean(enc_proj.reshape(N, H * W, head.hidden_dim), axis=1)
    q = head.query_embed[None] + pooled[:, None, :]
    qf = q.reshape(N * head.num_queries, head.hidden_dim)
    h = jnp.maximum(qf @ head.mlp_w1 + head.mlp_b1, 0.0)
    me = (h @ head.mlp_w2 + head.mlp_b2).reshape(N, head.num_queries, head.mask_dim)
    mf = mask_features.reshape(N, H * W, head.mask_dim)
    pm = jnp.einsum("bqc,bpc->bqp", me, mf).reshape(N, head.num_queries, H, W)
    ah = _bilinear_matrix(H, head.COMMON_STRIDE * H)
    aw = _bilinear_matrix(W, head.COMMON_STRIDE * W)
    return jnp.einsum("oh,bqhw,pw->bqop", ah, pm, aw)


if __name__ == "__main__":
    key = jax.random.PRNGKey(0)
    k_feat, k_param = jax.random.split(key)

    N, Cin, H, W = 2, 4, 16, 16
    features = {"res2": jax.random.normal(k_feat, (N, Cin, H, W), dtype=jnp.float32)}

    head = PerPixelBaselinePlusHeadPallas(k_param, in_channels=Cin)
    out, extras = head.forward(features)
    out = jax.block_until_ready(out)

    assert out.shape == (N, head.num_queries, H * 4, W * 4), out.shape
    assert extras == {}

    ref = _reference_forward(head, features)
    err = float(jnp.max(jnp.abs(out - ref)))
    assert jnp.allclose(out, ref, atol=2e-4, rtol=2e-4), err

    print("KERNEL_OK")
</pallas_src>

<mosaic_0001>
module attributes {stable_mosaic.version = 11 : i64} {
  func.func @_pixel_decoder_kernel(%arg0: i32, %arg1: i32, %arg2: memref<1x4x256xf32, #tpu.memory_space<vmem>>, %arg3: memref<32x4xf32, #tpu.memory_space<vmem>>, %arg4: memref<32x1xf32, #tpu.memory_space<vmem>>, %arg5: memref<32x4xf32, #tpu.memory_space<vmem>>, %arg6: memref<32x1xf32, #tpu.memory_space<vmem>>, %arg7: memref<32x32xf32, #tpu.memory_space<vmem>>, %arg8: memref<32x1xf32, #tpu.memory_space<vmem>>, %arg9: memref<1x32x256xf32, #tpu.memory_space<vmem>>, %arg10: memref<1x32x1xf32, #tpu.memory_space<vmem>>) attributes {dimension_semantics = [#tpu.dimension_semantics<parallel>, #tpu.dimension_semantics<arbitrary>], iteration_bounds = array<i64: 2, 1>, scalar_prefetch = 0 : i64, scratch_operands = 0 : i64, tpu.core_type = #tpu.core_type<tc>, window_params = [{transform_indices = @transform_0, window_bounds = array<i64: 1, 4, 256>}, {pipeline_mode = #tpu.pipeline_mode<synchronous>, transform_indices = @transform_1, window_bounds = array<i64: 32, 4>}, {pipeline_mode = #tpu.pipeline_mode<synchronous>, transform_indices = @transform_2, window_bounds = array<i64: 32, 1>}, {pipeline_mode = #tpu.pipeline_mode<synchronous>, transform_indices = @transform_3, window_bounds = array<i64: 32, 4>}, {pipeline_mode = #tpu.pipeline_mode<synchronous>, transform_indices = @transform_4, window_bounds = array<i64: 32, 1>}, {pipeline_mode = #tpu.pipeline_mode<synchronous>, transform_indices = @transform_5, window_bounds = array<i64: 32, 32>}, {pipeline_mode = #tpu.pipeline_mode<synchronous>, transform_indices = @transform_6, window_bounds = array<i64: 32, 1>}, {transform_indices = @transform_7, window_bounds = array<i64: 1, 32, 256>}, {transform_indices = @transform_8, window_bounds = array<i64: 1, 32, 1>}]} {
    %c0 = arith.constant 0 : index
    %c0_0 = arith.constant 0 : index
    %c0_1 = arith.constant 0 : index
    %0 = vector.load %arg2[%c0, %c0_0, %c0_1] : memref<1x4x256xf32, #tpu.memory_space<vmem>>, vector<1x4x256xf32>
    %1 = vector.shape_cast %0 : vector<1x4x256xf32> to vector<4x256xf32>
    %c0_2 = arith.constant 0 : index
    %c0_3 = arith.constant 0 : index
    %2 = vector.load %arg3[%c0_2, %c0_3] : memref<32x4xf32, #tpu.memory_space<vmem>>, vector<32x4xf32>
    %cst = arith.constant dense<0.000000e+00> : vector<32x256xf32>
    %3 = tpu.matmul %2, %1, %cst {dimension_numbers = #tpu.dot_dimension_numbers<[1], [0], [0], [1], [0, 0, 1, 1], [], []>} : vector<32x4xf32>, vector<4x256xf32>, vector<32x256xf32> -> vector<32x256xf32>
    %c0_4 = arith.constant 0 : index
    %c0_5 = arith.constant 0 : index
    %4 = vector.load %arg4[%c0_4, %c0_5] : memref<32x1xf32, #tpu.memory_space<vmem>>, vector<32x1xf32>
    %5 = vector.broadcast %4 : vector<32x1xf32> to vector<32x256xf32>
    %6 = arith.addf %3, %5 : vector<32x256xf32>
    %cst_6 = arith.constant 0.000000e+00 : f32
    %7 = vector.broadcast %cst_6 : f32 to vector<32x256xf32>
    %8 = arith.maximumf %6, %7 : vector<32x256xf32>
    %c0_7 = arith.constant 0 : index
    %c0_8 = arith.constant 0 : index
    %c0_9 = arith.constant 0 : index
    %9 = vector.load %arg9[%c0_7, %c0_8, %c0_9] : memref<1x32x256xf32, #tpu.memory_space<vmem>>, vector<1x32x256xf32>
    %10 = vector.shape_cast %9 : vector<1x32x256xf32> to vector<32x256xf32>
    %11 = vector.shape_cast %8 : vector<32x256xf32> to vector<1x32x256xf32>
    tpu.vector_store %arg9[%c0_7, %c0_8, %c0_9], %11 {strides = array<i32>} : memref<1x32x256xf32, #tpu.memory_space<vmem>>, vector<1x32x256xf32>,
    %c0_10 = arith.constant 0 : index
    %c0_11 = arith.constant 0 : index
    %12 = vector.load %arg5[%c0_10, %c0_11] : memref<32x4xf32, #tpu.memory_space<vmem>>, vector<32x4xf32>
    %cst_12 = arith.constant dense<0.000000e+00> : vector<32x256xf32>
    %13 = tpu.matmul %12, %1, %cst_12 {dimension_numbers = #tpu.dot_dimension_numbers<[1], [0], [0], [1], [0, 0, 1, 1], [], []>} : vector<32x4xf32>, vector<4x256xf32>, vector<32x256xf32> -> vector<32x256xf32>
    %c0_13 = arith.constant 0 : index
    %c0_14 = arith.constant 0 : index
    %14 = vector.load %arg6[%c0_13, %c0_14] : memref<32x1xf32, #tpu.memory_space<vmem>>, vector<32x1xf32>
    %15 = vector.broadcast %14 : vector<32x1xf32> to vector<32x256xf32>
    %16 = arith.addf %13, %15 : vector<32x256xf32>
    %cst_15 = arith.constant 0.000000e+00 : f32
    %17 = vector.broadcast %cst_15 : f32 to vector<32x256xf32>
    %18 = arith.maximumf %16, %17 : vector<32x256xf32>
    %c0_16 = arith.constant 0 : index
    %c0_17 = arith.constant 0 : index
    %19 = vector.load %arg7[%c0_16, %c0_17] : memref<32x32xf32, #tpu.memory_space<vmem>>, vector<32x32xf32>
    %cst_18 = arith.constant dense<0.000000e+00> : vector<32x256xf32>
    %20 = tpu.matmul %19, %18, %cst_18 {dimension_numbers = #tpu.dot_dimension_numbers<[1], [0], [0], [1], [0, 0, 1, 1], [], []>} : vector<32x32xf32>, vector<32x256xf32>, vector<32x256xf32> -> vector<32x256xf32>
    %c0_19 = arith.constant 0 : index
    %c0_20 = arith.constant 0 : index
    %21 = vector.load %arg8[%c0_19, %c0_20] : memref<32x1xf32, #tpu.memory_space<vmem>>, vector<32x1xf32>
    %22 = vector.broadcast %21 : vector<32x1xf32> to vector<32x256xf32>
    %23 = arith.addf %20, %22 : vector<32x256xf32>
    %cst_21 = arith.constant dense<0.000000e+00> : vector<32xf32>
    %24 = vector.multi_reduction <add>, %23, %cst_21 [1] : vector<32x256xf32> to vector<32xf32>
    %25 = vector.shape_cast %24 : vector<32xf32> to vector<32x1xf32>
    %c0_i32 = arith.constant 0 : i32
    %26 = arith.cmpi eq, %arg1, %c0_i32 : i32
    %27 = arith.extui %26 : i1 to i32
    %c0_i32_22 = arith.constant 0 : i32
    %28 = arith.cmpi ne, %27, %c0_i32_22 : i32
    scf.if %28 {
      %cst_29 = arith.constant 0.000000e+00 : f32
      %35 = vector.broadcast %cst_29 : f32 to vector<1x32x1xf32>
      %c0_30 = arith.constant 0 : index
      %c0_31 = arith.constant 0 : index
      %c0_32 = arith.constant 0 : index
      %36 = vector.load %arg10[%c0_30, %c0_31, %c0_32] : memref<1x32x1xf32, #tpu.memory_space<vmem>>, vector<1x32x1xf32>
      tpu.vector_store %arg10[%c0_30, %c0_31, %c0_32], %35 {strides = array<i32>} : memref<1x32x1xf32, #tpu.memory_space<vmem>>, vector<1x32x1xf32>,
    } else {
    }
    %c0_23 = arith.constant 0 : index
    %c0_24 = arith.constant 0 : index
    %c0_25 = arith.constant 0 : index
    %29 = vector.load %arg10[%c0_23, %c0_24, %c0_25] : memref<1x32x1xf32, #tpu.memory_space<vmem>>, vector<1x32x1xf32>
    %30 = vector.shape_cast %29 : vector<1x32x1xf32> to vector<32x1xf32>
    %31 = arith.addf %30, %25 : vector<32x1xf32>
    %c0_26 = arith.constant 0 : index
    %c0_27 = arith.constant 0 : index
    %c0_28 = arith.constant 0 : index
    %32 = vector.load %arg10[%c0_26, %c0_27, %c0_28] : memref<1x32x1xf32, #tpu.memory_space<vmem>>, vector<1x32x1xf32>
    %33 = vector.shape_cast %32 : vector<1x32x1xf32> to vector<32x1xf32>
    %34 = vector.shape_cast %31 : vector<32x1xf32> to vector<1x32x1xf32>
    tpu.vector_store %arg10[%c0_26, %c0_27, %c0_28], %34 {strides = array<i32>} : memref<1x32x1xf32, #tpu.memory_space<vmem>>, vector<1x32x1xf32>,
    return
  }
  func.func @transform_0(%arg0: i32, %arg1: i32) -> (i32, i32, i32) {
    %c0_i32 = arith.constant 0 : i32
    %c0_i32_0 = arith.constant 0 : i32
    return %arg0, %c0_i32, %arg1 : i32, i32, i32
  }
  func.func @transform_1(%arg0: i32, %arg1: i32) -> (i32, i32) {
    %c0_i32 = arith.constant 0 : i32
    %c0_i32_0 = arith.constant 0 : i32
    %c0_i32_1 = arith.constant 0 : i32
    return %c0_i32, %c0_i32_0 : i32, i32
  }
  func.func @transform_2(%arg0: i32, %arg1: i32) -> (i32, i32) {
    %c0_i32 = arith.constant 0 : i32
    %c0_i32_0 = arith.constant 0 : i32
    %c0_i32_1 = arith.constant 0 : i32
    return %c0_i32, %c0_i32_0 : i32, i32
  }
  func.func @transform_3(%arg0: i32, %arg1: i32) -> (i32, i32) {
    %c0_i32 = arith.constant 0 : i32
    %c0_i32_0 = arith.constant 0 : i32
    %c0_i32_1 = arith.constant 0 : i32
    return %c0_i32, %c0_i32_0 : i32, i32
  }
  func.func @transform_4(%arg0: i32, %arg1: i32) -> (i32, i32) {
    %c0_i32 = arith.constant 0 : i32
    %c0_i32_0 = arith.constant 0 : i32
    %c0_i32_1 = arith.constant 0 : i32
    return %c0_i32, %c0_i32_0 : i32, i32
  }
  func.func @transform_5(%arg0: i32, %arg1: i32) -> (i32, i32) {
    %c0_i32 = arith.constant 0 : i32
    %c0_i32_0 = arith.constant 0 : i32
    %c0_i32_1 = arith.constant 0 : i32
    return %c0_i32, %c0_i32_0 : i32, i32
  }
  func.func @transform_6(%arg0: i32, %arg1: i32) -> (i32, i32) {
    %c0_i32 = arith.constant 0 : i32
    %c0_i32_0 = arith.constant 0 : i32
    %c0_i32_1 = arith.constant 0 : i32
    return %c0_i32, %c0_i32_0 : i32, i32
  }
  func.func @transform_7(%arg0: i32, %arg1: i32) -> (i32, i32, i32) {
    %c0_i32 = arith.constant 0 : i32
    %c0_i32_0 = arith.constant 0 : i32
    return %arg0, %c0_i32, %arg1 : i32, i32, i32
  }
  func.func @transform_8(%arg0: i32, %arg1: i32) -> (i32, i32, i32) {
    %c0_i32 = arith.constant 0 : i32
    %c0_i32_0 = arith.constant 0 : i32
    %c0_i32_1 = arith.constant 0 : i32
    return %arg0, %c0_i32, %c0_i32_0 : i32, i32, i32
  }
}

</mosaic_0001>

<bundles_post_ra>
// kernel: tpu_custom_call.1
= control target key start
LH: loop header
LB: loop body
LE: loop exit
PB: predicated region body
PF: predicated region fallthrough
CT: control target
= control target key end

     0   :  { %14 = vsyncpa [#allocation3], 0  ;;  %s1437_s0 = inlined_call_operand.vmem [shape: f32[2,4,256], index: 0, kind: input, shape index: {}]   ;;  %s1438_s1 = inlined_call_operand.vmem [shape: f32[32,4], index: 1, kind: input, shape index: {}]   ;;  %s1439_s2 = inlined_call_operand.vmem [shape: f32[32,1], index: 2, kind: input, shape index: {}]   ;;  %s1440_s3 = inlined_call_operand.vmem [shape: f32[32,4], index: 3, kind: input, shape index: {}]   ;;  %s1441_s4 = inlined_call_operand.vmem [shape: f32[32,1], index: 4, kind: input, shape index: {}]   ;;  %s1442_s5 = inlined_call_operand.vmem [shape: f32[32,32], index: 5, kind: input, shape index: {}]   ;;  %s1443_s6 = inlined_call_operand.vmem [shape: f32[32,1], index: 6, kind: input, shape index: {}]   ;;  %s1444_s7 = inlined_call_operand.hbm [shape: f32[2,32,256], index: 7, kind: output, shape index: {0}]   ;;  %s1445_s8 = inlined_call_operand.vmem [shape: f32[2,32,1], index: 8, kind: output, shape index: {1}]  }
   0x1   :  { %16 = vsyncpa [#allocation3 + $0x1], 0  ;;  %s1157_s27 = smov 0   ;;  %s1159_s28 = smov 0  }
   0x2   :  { %s1161_s29 = smov 0   ;;  %s1163_s30 = smov 0  }
   0x3   :  { %s1165_s9 = smov 0   ;;  %s1167_s10 = smov 0  }
   0x4 LB: > { %s931_s11 = sadd.s32 4294967295, %s1105_s10   ;;  %s932_s12 = sadd.s32 4294967294, %s1105_s10   ;;  %s1105_s10 = sphi %s1167_s10, %s22_s10   ;;  %s1101_s9 = sphi %s1165_s9, %s1455_s9   ;;  %s1097_s30 = sphi %s1163_s30, %s1454_s30   ;;  %s1093_s29 = sphi %s1161_s29, %s1453_s29   ;;  %s1089_s28 = sphi %s1159_s28, %s1452_s28   ;;  %s1085_s27 = sphi %s1157_s27, %s1451_s27  }
   0x5   : > { %s34_s13 = sadd.s32 1, %s1101_s9  ;;  %s197_s14 = sadd.s32 1, %s1093_s29 }
   0x6   : > { %p36_p0 = scmp.ge.s32.totalorder %s34_s13, 2  ;;  %p207_p1 = scmp.ne.s32.totalorder %s1093_s29, %s1089_s28 }
   0x7   : > { %p208_p2 = scmp.eq.s32.totalorder %s931_s11, 1  ;;  %p213_p3 = scmp.ne.s32.totalorder %s1089_s28, %s1085_s27 }
   0x8   : > { %s1457_s13 = smov (%p36_p0, %s34_s13), 0  ;;  %p214_p5 = scmp.eq.s32.totalorder %s932_s12, 1 }
   0x9   : > { %1447 = sst [smem:[#allocation5_spill]] %s1457_s13  ;;  %p1197_p4 = por %p208_p2, %p207_p1 }
   0xa   : > { %s192_s16 = ssub.s32 %s1101_s9, %s1457_s13  ;;  %p935_p6 = scmp.ge.s32.totalorder %s1105_s10, 1 }
   0xb   : > { %p195_p7 = scmp.eq.s32.totalorder %s192_s16, 0  ;;  %p1204_p8 = por %p214_p5, %p213_p3 }
   0xc   : > { %p289_p9 = scmp.lt.s32.totalorder %s1105_s10, 3 }
   0xd   : > { %s1210_s18 = scalar_select %p195_p7, %s1093_s29, %s197_s14  }
   0xe   : > { %p290_p10 = pnand %p935_p6, %p289_p9 }
   0xf   : > { %p333_p11 = scmp.lt.s32.totalorder (!%p290_p10), %s1097_s30, 1  ;;  %s322_s22 = sand.u32 (!%p290_p10), 1, %s1089_s28  }
  0x10   : > { %293 = sbr.rel (%p290_p10) target bundleno = 633 (0x279), region = 48  ;;  %s936_s23 = sshll.u32 (!%p290_p10), %s322_s22, 6 }
  0x11   : > { %s1303_s13 = scalar_lea.vmem (!%p290_p10), [#allocation2], %s936_s23  ;;  %s964_s20 = sshll.u32 (!%p290_p10), %s1097_s30, 10 }
  0x12   : > { %s1109_s26 = smov (!%p290_p10), [#allocation2]  }
  0x13   : > { %s1033_s11 = sshll.u32 (!%p290_p10), %s1109_s26, 4  ;;  %s1034_s11 = int_to_ptr.vmem [resolvable:$false] %s1033_s11 }
  0x14   : > { %s1035_s12 = scalar_lea.vmem (!%p290_p10), %s1034_s11, 2048 }
  0x15   : > { %v1107_v0 = vmov 0.0   ;;  %s1216_s19 = scalar_select %p333_p11, %s1097_s30, 1  ;;  %v1108_v1 = vmov 0   ;;  %v507_v2 = vld [vmem:[%s1441_s4 + $0x8] sm:$0xff]  ;;  %v509_v3 = vld [vmem:[%s1441_s4 + $0x18] sm:$0xff]  ;;  %v506_v4 = vld [vmem:[%s1441_s4] sm:$0xff] }
  0x16   : > { %473 = vmatprep.mubr.f32.mxu1 %v1107_v0  ;;  %461 = vmatprep.mubr.f32.mxu0 %v1107_v0  ;;  %v508_v5 = vld [vmem:[%s1441_s4 + $0x10] sm:$0xff]  ;;  %vm392_vm0 = vcmask 1043456   ;;  %vm379_vm1 = vcmask 31744   ;;  %v349_v9 = vld [vmem:[%s1438_s1] sm:$0xff]  ;;  %v644_v10 = vld [vmem:[%s1443_s6 + $0x8] sm:$0xff]  ;;  %vm667_vm2 = vcmask 261120  }
  0x17   : > { %1027 = vset.pattern.permute.xlu1 %v1108_v1  ;;  %1026 = vset.pattern.permute.xlu0 %v1108_v1  ;;  %s962_s24 = sshll.u32 %s1216_s19, 3  ;;  %v351_v8 = vld [vmem:[%s1438_s1 + $0x10] sm:$0xff]  ;;  %v643_v11 = vld [vmem:[%s1443_s6] sm:$0xff]  ;;  %v352_v12 = vld [vmem:[%s1438_s1 + $0x18] sm:$0xff]  ;;  %s963_s21 = sshll.u32 %s1216_s19, 5  ;;  %vm785_vm3 = vcmask 7168  }
  0x18   : > { %517 = vperm.xlu1 %1027, %v507_v2   ;;  %527 = vperm.xlu0 %1026, %v509_v3   ;;  %s340_s14 = scalar_lea.vmem %s1437_s0, %s962_s24  ;;  %v646_v13 = vld [vmem:[%s1443_s6 + $0x18] sm:$0xff]  ;;  %v645_v14 = vld [vmem:[%s1443_s6 + $0x10] sm:$0xff]  ;;  %v502_v15 = vld [vmem:[%s1440_s3] sm:$0xff]  ;;  %s1326_s25 = scalar_lea.vmem %s1445_s8, %s963_s21 }
  0x19   : > { %v348_v6 = vld [vmem:[%s340_s14] sm:$0xff]  ;;  %v503_v17 = vld [vmem:[%s1440_s3 + $0x8] sm:$0xff]  ;;  %v504_v18 = vld [vmem:[%s1440_s3 + $0x10] sm:$0xff]  ;;  %786 = vst.msk [vmem:[%s1326_s25] sm:$0xff] %vm785_vm3, %v1107_v0  ;;  %s824_s21 = sshll.u32 %s1303_s13, 4  ;;  %s1384_s19 = scalar_lea.hbm %s1444_s7, %s964_s20  ;;  %s1386_s21 = int_to_ptr.vmem [resolvable:$true] %s824_s21 }
  0x1a   : > { %v378_v7 = vcombine.high %v348_v6, %v348_v6  ;;  %v353_v16 = vld [vmem:[%s1439_s2] sm:$0xff]  ;;  %v505_v19 = vld [vmem:[%s1440_s3 + $0x18] sm:$0xff]  ;;  %v350_v20 = vld [vmem:[%s1438_s1 + $0x8] sm:$0xff]  ;;  %787 = vst.msk [vmem:[%s1326_s25 + $0x8] sm:$0xff] %vm785_vm3, %v1107_v0  ;;  %s1392_s30 = scalar_lea.sflag [#allocation3], %s322_s22  ;;  %p1036_p1 = scmp.lt.s32.totalorder %s1386_s21, %s1034_s11 }
  0x1b   : > { %v639_v62 = vld [vmem:[%s1442_s5] sm:$0xff]  ;;  %v640_v63 = vld [vmem:[%s1442_s5 + $0x8] sm:$0xff]  ;;  %v641_v1 = vld [vmem:[%s1442_s5 + $0x10] sm:$0xff]  ;;  %788 = vst.msk [vmem:[%s1326_s25 + $0x10] sm:$0xff] %vm785_vm3, %v1107_v0 }
  0x1c   : > { %512 = vperm.xlu1 %1027, %v506_v4   ;;  %522 = vperm.xlu0 %1026, %v508_v5   ;;  %v642_v2 = vld [vmem:[%s1442_s5 + $0x18] sm:$0xff]  ;;  %789 = vst.msk [vmem:[%s1326_s25 + $0x18] sm:$0xff] %vm785_vm3, %v1107_v0 }
  0x1d   : > { %965 = vmatprep.subr.msk.mxu1 %vm392_vm0, %v378_v7  ;;  %941 = vmatprep.subr.msk.mxu0 %vm392_vm0, %v378_v7 }
  0x1e   : > { %966 = vmatpush1.msk.msra.mxu1 %vm392_vm0, %v348_v6  ;;  %942 = vmatpush1.msk.msra.mxu0 %vm392_vm0, %v348_v6 }
  0x1f   : > { %945 = vmatmul.mubr.msk.f32.vlgmr.msra.gmra.mxu1 %vm379_vm1, %v351_v8  ;;  %947 = vmatprep.subr.msk.mxu1 %vm392_vm0, %v378_v7 }
  0x20   : > { %948 = vmatpush1.msk.msra.mxu1 %vm392_vm0, %v348_v6  ;;  %479 = vmatprep.mubr.f32.mxu1 %v1107_v0 }
  0x21   : > { %943 = vmatmul.mubr.msk.f32.vlgmr.msra.gmra.mxu0 %vm379_vm1, %v349_v9  ;;  %654 = vperm.xlu1 %1027, %v644_v10  }
  0x22   : > { %649 = vperm.xlu0 %1026, %v643_v11   ;;  %467 = vmatprep.mubr.f32.mxu0 %v1107_v0 }
  0x23   : > { %946 = vmatmul.mubr.msk.f32.gmra.mxu1 %vm379_vm1, %v352_v12 }
  0x24   : > { %606 = vmatprep.mubr.f32.mxu1 %v1107_v0 }
  0x25   : > { %664 = vperm.xlu1 %1027, %v646_v13   ;;  %944 = vmatmul.mubr.msk.f32.gmra.mxu0 %vm379_vm1, %v350_v20 }
  0x26   : > { %659 = vperm.xlu0 %1026, %v645_v14   ;;  %744 = vmatprep.mubr.f32.mxu0 %v1107_v0 }
  0x27   : > { %949 = vmatmul.mubr.msk.f32.vlgmr.msra.gmra.mxu1 %vm379_vm1, %v502_v15 }
  0x28   : > { %612 = vmatprep.mubr.f32.mxu1 %v1107_v0 }
  0x29   : > { %359 = vperm.xlu1 %1027, %v353_v16  }
  0x2b   : > { %950 = vmatmul.mubr.msk.f32.gmra.mxu1 %vm379_vm1, %v503_v17 }
  0x2c   : > { %618 = vmatprep.mubr.f32.mxu1 %v1107_v0 }
  0x2f   : > { %951 = vmatmul.mubr.msk.f32.gmra.mxu1 %vm379_vm1, %v504_v18 }
  0x30   : > { %624 = vmatprep.mubr.f32.mxu1 %v1107_v0 }
  0x33   : > { %952 = vmatmul.mubr.msk.f32.gmra.mxu1 %vm379_vm1, %v505_v19 }
  0x93   : > { %v518_v21 = vpop.permute.xlu1 %517  ;;  %v528_v40 = vpop.permute.xlu0 %527 }
  0x97   : > { %v513_v22 = vpop.permute.xlu1 %512  ;;  %v523_v44 = vpop.permute.xlu0 %522 }
  0x9c   : > { %v1288_v23 = vpop.permute.xlu1 %654 }
  0x9d   : > { %v650_v6 = vpop.permute.xlu0 %649 }
  0xa0   : > { %v1290_v24 = vpop.permute.xlu1 %664 }
  0xa4   : > { %v360_v26 = vpop.permute.xlu1 %359 }
  0xdf   : > { %v1293_v25 = vpop.f32.mrf.mxu1 }
  0xe1   : > { %v1297_v27 = vpop.f32.mrf.mxu1  ;;  %v463_v28 = vpop.f32.mrf.mxu0 }
  0xe2   : > { %v464_v29 = vadd.f32 %v463_v28, %v360_v26 }
  0xe3   : > { %v1299_v30 = vpop.f32.mrf.mxu1  ;;  %v465_v31 = vpop.f32.mrf.mxu0 }
  0xe4   : > { %v486_v32 = vmax.f32 %v464_v29, 0.0  ;;  %v466_v33 = vadd.f32 %v465_v31, %v360_v26  ;;  %v355_v29 = vld [vmem:[%s1439_s2 + $0x10] sm:$0xff]  ;;  %v356_v31 = vld [vmem:[%s1439_s2 + $0x18] sm:$0xff] }
  0xe5   : > { %v1301_v34 = vpop.f32.mrf.mxu1  ;;  %v1340_v3 = vpop.f32.mrf.mxu0 }
  0xe6   : > { %494 = vst [vmem:[%s1303_s13] sm:$0xff] %v486_v32  ;;  %v487_v35 = vmax.f32 %v466_v33, 0.0  ;;  %v354_v32 = vld [vmem:[%s1439_s2 + $0x8] sm:$0xff] }
  0xe7   : > { %v608_v36 = vpop.f32.mrf.mxu1  ;;  %v1342_v4 = vpop.f32.mrf.mxu0 }
  0xe8   : > { %495 = vst [vmem:[%s1303_s13 + $0x8] sm:$0xff] %v487_v35  ;;  %v609_v56 = vadd.f32 %v608_v36, %v513_v22  ;;  %v791_v36 = vld [vmem:[%s1326_s25 + $0x8] sm:$0xff] }
  0xe9   : > { %v610_v37 = vpop.f32.mrf.mxu1 }
  0xea   : > { %v611_v54 = vadd.f32 %v610_v37, %v513_v22  ;;  %v631_v61 = vmax.f32 %v609_v56, 0.0 }
  0xeb   : > { %v614_v38 = vpop.f32.mrf.mxu1 }
  0xec   : > { %v615_v52 = vadd.f32 %v614_v38, %v518_v21  ;;  %v632_v60 = vmax.f32 %v611_v54, 0.0 }
  0xed   : > { %v616_v39 = vpop.f32.mrf.mxu1 }
  0xee   : > { %v617_v50 = vadd.f32 %v616_v39, %v518_v21  ;;  %v633_v59 = vmax.f32 %v615_v52, 0.0  ;;  %v792_v39 = vld [vmem:[%s1326_s25 + $0x10] sm:$0xff] }
  0xef   : > { %v620_v41 = vpop.f32.mrf.mxu1 }
  0xf0   : > { %v621_v49 = vadd.f32 %v620_v41, %v523_v44  ;;  %v634_v58 = vmax.f32 %v617_v50, 0.0 }
  0xf1   : > { %v622_v42 = vpop.f32.mrf.mxu1 }
  0xf2   : > { %v623_v47 = vadd.f32 %v622_v42, %v523_v44  ;;  %v635_v57 = vmax.f32 %v621_v49, 0.0 }
  0xf3   : > { %v626_v43 = vpop.f32.mrf.mxu1 }
  0xf4   : > { %v627_v45 = vadd.f32 %v626_v43, %v528_v40  ;;  %v636_v55 = vmax.f32 %v623_v47, 0.0 }
  0xf5   : > { %v628_v46 = vpop.f32.mrf.mxu1 }
  0xf6   : > { %v629_v48 = vadd.f32 %v628_v46, %v528_v40  ;;  %v637_v53 = vmax.f32 %v627_v45, 0.0  ;;  %v793_v45 = vld [vmem:[%s1326_s25 + $0x18] sm:$0xff] }
  0xf8   : > { %v638_v51 = vmax.f32 %v629_v48, 0.0 }
  0xfa   : > { %704 = vmatprep.subr.mxu0 %v638_v51 }
  0xfb   : > { %705 = vmatpush1.msra.mxu0 %v637_v53 }
  0xfc   : > { %706 = vmatprep.subr.mxu0 %v636_v55 }
  0xfd   : > { %707 = vmatpush1.msra.mxu0 %v635_v57 }
  0xfe   : > { %708 = vmatprep.subr.mxu0 %v634_v58 }
  0xff   : > { %709 = vmatpush1.msra.mxu0 %v633_v59 }
 0x100   : > { %710 = vmatprep.subr.mxu0 %v632_v60 }
 0x101   : > { %711 = vmatpush1.msra.mxu0 %v631_v61 }
 0x102   : > { %953 = vmatmul.mubr.msk.f32.vlgmr.msra.gmra.mxu0 %vm667_vm2, %v639_v62 }
 0x103   : > { %750 = vmatprep.mubr.f32.mxu0 %v1107_v0 }
 0x106   : > { %954 = vmatmul.mubr.msk.f32.gmra.mxu0 %vm667_vm2, %v640_v63 }
 0x107   : > { %756 = vmatprep.mubr.f32.mxu0 %v1107_v0 }
 0x10a   : > { %955 = vmatmul.mubr.msk.f32.gmra.mxu0 %vm667_vm2, %v641_v1 }
 0x10b   : > { %762 = vmatprep.mubr.f32.mxu0 %v1107_v0  ;;  %v660_v0 = vpop.permute.xlu0 %659 }
 0x10e   : > { %956 = vmatmul.mubr.msk.f32.gmra.mxu0 %vm667_vm2, %v642_v2 }
 0x1c2   : > { %v746_v5 = vpop.f32.mrf.mxu0 }
 0x1c3   : > { %v747_v8 = vadd.f32 %v746_v5, %v650_v6 }
 0x1c4   : > { %v748_v7 = vpop.f32.mrf.mxu0 }
 0x1c5   : > { %v749_v9 = vadd.f32 %v748_v7, %v650_v6 }
 0x1c6   : > { %v752_v10 = vpop.f32.mrf.mxu0 }
 0x1c7   : > { %v769_v11 = vadd.f32 %v749_v9, %v747_v8  ;;  %v753_v13 = vadd.f32 %v752_v10, %v1288_v23 }
 0x1c8   : > { %v754_v12 = vpop.f32.mrf.mxu0 }
 0x1c9   : > { %v755_v14 = vadd.f32 %v754_v12, %v1288_v23  ;;  %770 = vadd.xlane.f32.xlu0 %v769_v11 }
 0x1ca   : > { %v758_v15 = vpop.f32.mrf.mxu0 }
 0x1cb   : > { %v772_v16 = vadd.f32 %v755_v14, %v753_v13  ;;  %v759_v18 = vadd.f32 %v758_v15, %v660_v0 }
 0x1cc   : > { %v760_v17 = vpop.f32.mrf.mxu0 }
 0x1cd   : > { %v761_v19 = vadd.f32 %v760_v17, %v660_v0  ;;  %773 = vadd.xlane.f32.xlu1 %v772_v16 }
 0x1ce   : > { %v764_v20 = vpop.f32.mrf.mxu0 }
 0x1cf   : > { %v775_v21 = vadd.f32 %v761_v19, %v759_v18  ;;  %v765_v26 = vadd.f32 %v764_v20, %v1290_v24 }
 0x1d0   : > { %v766_v22 = vpop.f32.mrf.mxu0 }
 0x1d1   : > { %v767_v28 = vadd.f32 %v766_v22, %v1290_v24  ;;  %776 = vadd.xlane.f32.xlu0 %v775_v21  ;;  %v790_v24 = vld [vmem:[%s1326_s25] sm:$0xff] }
 0x1d3   : > { %v778_v23 = vadd.f32 %v767_v28, %v765_v26 }
 0x1d5   : > { %779 = vadd.xlane.f32.xlu0 %v778_v23 }
 0x1de   : > { %369 = vperm.xlu1 %1027, %v355_v29  }
 0x1e2   : > { %374 = vperm.xlu1 %1027, %v356_v31  }
 0x1eb   : > { %364 = vperm.xlu0 %1026, %v354_v32  }
 0x252   : > { %v771_v33 = vpop.xlane.xlu0 %770 }
 0x253   : > { %v794_v35 = vadd.f32 %v790_v24, %v771_v33 }
 0x255   : > { %799 = vst.msk [vmem:[%s1326_s25] sm:$0xff] %vm785_vm3, %v794_v35 }
 0x256   : > { %v774_v37 = vpop.xlane.xlu1 %773 }
 0x257   : > { %v795_v38 = vadd.f32 %v791_v36, %v774_v37 }
 0x259   : > { %800 = vst.msk [vmem:[%s1326_s25 + $0x8] sm:$0xff] %vm785_vm3, %v795_v38 }
 0x25a   : > { %v370_v40 = vpop.permute.xlu1 %369  ;;  %v777_v41 = vpop.xlane.xlu0 %776 }
 0x25b   : > { %v476_v42 = vadd.f32 %v1293_v25, %v370_v40  ;;  %v478_v43 = vadd.f32 %v1297_v27, %v370_v40  ;;  %v796_v44 = vadd.f32 %v792_v39, %v777_v41 }
 0x25d   : > { %v490_v46 = vmax.f32 %v476_v42, 0.0  ;;  %v491_v47 = vmax.f32 %v478_v43, 0.0  ;;  %801 = vst.msk [vmem:[%s1326_s25 + $0x10] sm:$0xff] %vm785_vm3, %v796_v44 }
 0x25e   : > { %v375_v48 = vpop.permute.xlu1 %374  ;;  %v780_v49 = vpop.xlane.xlu0 %779 }
 0x25f   : > { %498 = vst [vmem:[%s1303_s13 + $0x20] sm:$0xff] %v490_v46  ;;  %499 = vst [vmem:[%s1303_s13 + $0x28] sm:$0xff] %v491_v47  ;;  %v482_v50 = vadd.f32 %v1299_v30, %v375_v48  ;;  %v484_v25 = vadd.f32 %v1301_v34, %v375_v48  ;;  %v797_v27 = vadd.f32 %v793_v45, %v780_v49 }
 0x261   : > { %v492_v51 = vmax.f32 %v482_v50, 0.0  ;;  %v493_v52 = vmax.f32 %v484_v25, 0.0  ;;  %802 = vst.msk [vmem:[%s1326_s25 + $0x18] sm:$0xff] %vm785_vm3, %v797_v27  ;;  %s1029_s25 = scalar_lea.vmem %s1386_s21, 1024 }
 0x262   : > { %p1030_p12 = scmp.ne.s32.totalorder %s1386_s21, %s1029_s25  ;;  %p1037_p2 = scmp.lt.s32.totalorder %s1035_s12, %s1029_s25 }
 0x263   : > { %500 = vst [vmem:[%s1303_s13 + $0x30] sm:$0xff] %v492_v51  ;;  %501 = vst [vmem:[%s1303_s13 + $0x38] sm:$0xff] %v493_v52 }
 0x264   : > { %p1031_p13 = pnand %p1030_p12, %p1197_p4  ;;  %p1038_p3 = por %p1037_p2, %p1036_p1 }
 0x266   : > { %v365_v53 = vpop.permute.xlu0 %364  ;;  %p1032_p0 = pneg %p1031_p13 }
 0x267   : > { %v470_v54 = vadd.f32 %v1340_v3, %v365_v53  ;;  %v472_v30 = vadd.f32 %v1342_v4, %v365_v53 }
 0x268   : > { %p1039_p5 = pnand %p1038_p3, %p1032_p0 }
 0x269   : > { %v488_v34 = vmax.f32 %v470_v54, 0.0  ;;  %v489_v55 = vmax.f32 %v472_v30, 0.0 }
 0x26b   : > { %496 = vst [vmem:[%s1303_s13 + $0x10] sm:$0xff] %v488_v34  ;;  %497 = vst [vmem:[%s1303_s13 + $0x18] sm:$0xff] %v489_v55 }
 0x26c   : > { %1042 = shalt.err (!%p1039_p5)
}
 0x26d   : > { %s1043_s22 = scalar_lea.hbm %s1384_s19, 1024  ;;  %s1047_s16 = scalar_lea.hbm %s1444_s7, 2048 }
 0x26e   : > { %p1044_p6 = scmp.ne.s32.totalorder %s1384_s19, %s1043_s22  ;;  %p1048_p10 = scmp.lt.s32.totalorder %s1384_s19, %s1444_s7 }
 0x26f   : > { %p1049_p11 = scmp.lt.s32.totalorder %s1047_s16, %s1043_s22 }
 0x270   : > { %p1045_p7 = pnand %p1044_p6, %p1197_p4 }
 0x271   : > { %p1050_p12 = por %p1049_p11, %p1048_p10 }
 0x272   : > { %p1046_p9 = pneg %p1045_p7 }
 0x274   : > { %p1051_p13 = pnand %p1050_p12, %p1046_p9 }
 0x276   : > { %1054 = shalt.err (!%p1051_p13)
}
 0x277   : > { %s1110_s24 = smov 256   ;;  %s1111_s25 = smov 16  }
 0x278   : > { %967 = dma.vmem_to_hbm [thread:$0]  (%p1197_p4), %s1386_s21, 1024, %s1384_s19, %s1392_s30, %s1110_s24, %s1110_s24, %s1111_s25  }
 0x279 PF: > { %p973_p0 = scmp.ge.s32.totalorder %s1105_s10, 2  ;;  %s842_s26 = sand.u32 1, %s1085_s27  }
 0x27a   : > { %s843_s11 = scalar_lea.sflag [#allocation3], %s842_s26 }
 0x27b   : > { %p970_p1 = pnand %p973_p0, %p1204_p8 }
 0x27d   : > { %p971_p2 = pneg %p970_p1 }
 0x27f   : > { %1080 = dma.done.wait (%p971_p2), %s843_s11, 1024  }
 0x280   : > { %1082 = vsyncadd (%p971_p2), %s843_s11, 4294966272  ;;  %s22_s10 = sadd.s32 1, %s1105_s10   ;;  %s1450_s15 = sld [smem:[#allocation5_spill]] }
 0x281   : > { %p19_p3 = scmp.ge.s32.totalorder %s22_s10, 4   ;;  %s1451_s27 = smov %s1089_s28 }
 0x282   : > { %s1452_s28 = smov %s1093_s29  ;;  %s1453_s29 = smov %s1210_s18 }
 0x283   : > { %s1454_s30 = smov %s1101_s9  ;;  %21 = sbr.rel (!%p19_p3) target bundleno = 4 (0x4), region = 99 }
 0x286   : > { %s1455_s9 = smov %s1450_s15 }
 0x288   :  { %856 = vsyncpa [#allocation3], 1 }
 0x289   :  { %858 = vsyncpa [#allocation3 + $0x1], 1 }

</bundles_post_ra>
